<compile_context>
chip_gen: v7x
topology: tpu7x:2x2x1
jax: 0.10.0
libtpu: 0.0.40
codegen_flags: <defaults>
</compile_context>

<pallas_src>
import functools

import jax
import jax.numpy as jnp
from jax.experimental import pallas as pl
from jax.experimental.pallas import tpu as pltpu


def _round_up(x, m):
    return ((x + m - 1) // m) * m


def _vmem_budget_bytes():
    """Per-generation VMEM budget for the double-buffered blocks."""
    try:
        cap = pltpu.get_tpu_info().vmem_capacity_bytes
    except Exception:  # CPU interpret / older runtimes
        cap = 64 * 1024 * 1024
    # ~70% of physical leaves headroom for compiler scratch:
    #   v5e/v6e (128 MiB) -> ~89 MiB, v7x (64 MiB/TC) -> ~44 MiB.
    return max(16 * 1024 * 1024, (cap * 7) // 10)


# -----------------------------------------------------------------------------
# Fused kernel, one grid step per tile of `tb` graphs.
#   z   = relu(A_block @ Xc + bc)          # [n*tb, n]  (GCNConv+fc1 folded)
#   out = b2 + sum_r z[r*tb:(r+1)*tb] @ W2^T[r*n:(r+1)*n, :]   # fc2
# -----------------------------------------------------------------------------
def gcn_fused_kernel(a_ref, xc_ref, bc_ref, w2_ref, b2_ref, o_ref):
    n = w2_ref.shape[0]          # nodes per graph
    tb = o_ref.shape[0]          # graphs per tile

    # Single merged adjacency matmul for all n nodes of the tb graphs
    # (bf16 MXU inputs, f32 accumulation), bias + ReLU fused on top.
    z = jnp.maximum(
        jnp.dot(a_ref[...], xc_ref[...], preferred_element_type=jnp.float32)
        + bc_ref[...],
        0.0,
    )                                                        # [n*tb, n] f32

    w2 = w2_ref[...]                                         # [n, n, n2_pad] bf16
    # Local f32 accumulator (stays in vregs); o_ref is written exactly once.
    acc = jnp.broadcast_to(b2_ref[...], o_ref.shape)         # [tb, n2_pad] f32
    for r in range(n):  # static unroll, n_neurons is small
        zr = z[r * tb:(r + 1) * tb, :].astype(jnp.bfloat16)  # [tb, n]
        acc = acc + jnp.dot(zr, w2[r],
                            preferred_element_type=jnp.float32)
    o_ref[...] = acc


def _pick_batch_tile(num_graphs, n, n_nodes, n2_pad, budget_bytes):
    """Largest power-of-two graph tile (multiple of 8) whose double-buffered
    adjacency + output blocks fit the VMEM budget; the batch is padded up to a
    multiple of it (no ragged full-batch fallback)."""

    def blocks_bytes(t):
        # adjacency block (bf16) + output block (f32), both double-buffered.
        return 2 * (n * t * n_nodes * 2) + 2 * (t * n2_pad * 4)

    tb = 8
    while tb * 2 <= 512 and blocks_bytes(tb * 2) <= budget_bytes:
        tb *= 2
    b_pad = _round_up(num_graphs, 8)
    tb = min(tb, b_pad)
    # Keep >= 2 grid steps when the batch allows it (v7x megacore only helps
    # with >= 2 independent steps on the "parallel" axis).
    while tb > 8 and b_pad // tb < 2:
        tb //= 2
    b_pad = _round_up(num_graphs, tb)
    return tb, b_pad


def gcn_fused_pallas(a_flat, xc, bc, w2_stk, b2_pad, *, n, tb, grid):
    n_nodes, n_out = xc.shape
    n2_pad = w2_stk.shape[2]
    b_pad = grid * tb

    budget = _vmem_budget_bytes()
    vmem_need = (
        2 * (n * tb * n_nodes * 2)        # adjacency block, double-buffered
        + 2 * (tb * n2_pad * 4)           # output block, double-buffered
        + 2 * (n_nodes * n_out * 2)       # Xc
        + 2 * (n * n_out * n2_pad * 2)    # stacked fc2 weight
        + (1 << 20)                       # biases + slack
    )
    vmem_limit = min(max(vmem_need, 16 * 1024 * 1024), budget)

    return pl.pallas_call(
        gcn_fused_kernel,
        out_shape=jax.ShapeDtypeStruct((b_pad, n2_pad), jnp.float32),
        grid=(grid,),
        in_specs=[
            # Adjacency, pre-permuted so block i is a ready 2-D [n*tb, N] slab.
            pl.BlockSpec((n * tb, n_nodes), lambda i: (i, 0)),
            pl.BlockSpec((n_nodes, n_out), lambda i: (0, 0)),     # Xc
            pl.BlockSpec((1, n_out), lambda i: (0, 0)),           # bc
            pl.BlockSpec((n, n_out, n2_pad), lambda i: (0, 0, 0)),  # W2^T stacked
            pl.BlockSpec((1, n2_pad), lambda i: (0, 0)),          # b2 (padded)
        ],
        out_specs=pl.BlockSpec((tb, n2_pad), lambda i: (i, 0)),
        compiler_params=pltpu.CompilerParams(
            dimension_semantics=("parallel",),
            vmem_limit_bytes=vmem_limit,
        ),
    )(a_flat, xc, bc, w2_stk, b2_pad)


# -----------------------------------------------------------------------------
# Dense GCN normalization A_hat = D^{-1/2} (A + I) D^{-1/2}
# (matches torch_geometric gcn_norm with add_remaining_self_loops: nodes that
# already have a self loop do NOT get a second one).
# edge_index layout matches PyG: row 0 = source, row 1 = target.
# -----------------------------------------------------------------------------
def build_norm_adj(edge_index, num_nodes):
    # TODO(synk): for large graphs replace this dense O(N^2) adjacency with a
    # PrefetchScalarGridSpec sparse neighbor gather so bytes scale with |E|;
    # if batched graphs have no cross-graph edges, exploit the block-diagonal
    # structure instead of a dense N x N matmul.
    src = edge_index[0]
    dst = edge_index[1]
    adj = jnp.zeros((num_nodes, num_nodes), jnp.float32).at[dst, src].add(1.0)
    diag = jnp.diagonal(adj)
    adj = adj + jnp.diag(jnp.where(diag > 0.0, 0.0, 1.0))   # remaining self loops
    deg = adj.sum(axis=1)
    dinv = jnp.where(deg > 0, jax.lax.rsqrt(deg), 0.0)
    return dinv[:, None] * adj * dinv[None, :]


# -----------------------------------------------------------------------------
# One-time parameter packing: fold Wg into fc1 (no nonlinearity in between),
# split W2^T into per-node row blocks and zero-pad to a 128-lane-dense width.
# -----------------------------------------------------------------------------
def pack_params(params, n_neurons):
    n = n_neurons
    n2 = n * n
    n2_pad = _round_up(n2, 128)
    wc = params["wg_t"] @ params["w1_t"]                   # [T, n]  f32
    bc = params["bg"] @ params["w1_t"] + params["b1"]      # [1, n]  f32
    w2_pad = jnp.zeros((n2, n2_pad), jnp.float32).at[:, :n2].set(params["w2_t"])
    b2_pad = jnp.zeros((1, n2_pad), jnp.float32).at[:, :n2].set(params["b2"])
    return {
        "wc": wc,
        "bc": bc,
        # w2_stk[r, c, :] = W2^T[r*n + c, :]
        "w2_stk": w2_pad.reshape(n, n, n2_pad).astype(jnp.bfloat16),
        "b2_pad": b2_pad,
    }


# -----------------------------------------------------------------------------
# Full GCN forward (jitted so the adjacency build / permute / Xc precompute
# fuse with the kernel instead of separate O(N^2) HBM passes).
# -----------------------------------------------------------------------------
@functools.partial(jax.jit, static_argnames=("n_neurons",))
def gcn_forward(x, edge_index, packed, n_neurons):
    n_nodes, _ = x.shape
    n = n_neurons
    assert n_nodes % n == 0, "number of nodes must be a multiple of n_neurons"
    B = n_nodes // n
    n2 = n * n
    n2_pad = packed["b2_pad"].shape[1]

    # Folded GCNConv+fc1 input: Xc = X @ (Wg^T @ W1^T), tiny XLA matmul.
    xc = (x @ packed["wc"]).astype(jnp.bfloat16)            # [N, n]

    # TODO(synk): on v7x, stream the adjacency in fp8 e4m3 (native MXU input)
    # to halve its HBM bytes; not applicable on v5e/v6e.
    a_norm = build_norm_adj(edge_index, n_nodes).astype(jnp.bfloat16)   # [N, N]

    tb, b_pad = _pick_batch_tile(B, n, n_nodes, n2_pad, _vmem_budget_bytes())
    grid = b_pad // tb

    # Permute to node-major / graph-minor order inside each graph tile so the
    # kernel's block is directly a 2-D [n*tb, N] matmul operand:
    #   a_flat[g*n*tb + r*tb + t, :] = A_hat[(g*tb + t)*n + r, :]
    a_r = a_norm.reshape(B, n, n_nodes)
    if b_pad > B:
        a_r = jnp.pad(a_r, ((0, b_pad - B), (0, 0), (0, 0)))
    a_flat = (
        a_r.reshape(grid, tb, n, n_nodes)
        .transpose(0, 2, 1, 3)
        .reshape(grid * n * tb, n_nodes)
    )

    y_pad = gcn_fused_pallas(
        a_flat, xc, packed["bc"], packed["w2_stk"], packed["b2_pad"],
        n=n, tb=tb, grid=grid,
    )                                                        # [b_pad, n2_pad]
    return y_pad[:B, :n2].reshape(-1)                        # flatten()


# -----------------------------------------------------------------------------
# Pure-JAX reference (f32, un-fused association) for a sanity check
# -----------------------------------------------------------------------------
def gcn_reference(x, edge_index, params, n_neurons):
    n_nodes, _ = x.shape
    a = build_norm_adj(edge_index, n_nodes)
    h = a @ (x @ params["wg_t"]) + params["bg"]
    z = jnp.maximum(h @ params["w1_t"] + params["b1"], 0.0)
    x2 = z.reshape(-1, n_neurons * n_neurons)
    y = x2 @ params["w2_t"] + params["b2"]
    return y.reshape(-1)


def init_params(key, n_neurons, timestep_bin_length):
    T = timestep_bin_length
    n = n_neurons
    n2 = n * n
    k = jax.random.split(key, 6)

    def u(kk, shape, fan_in):
        bound = 1.0 / jnp.sqrt(jnp.float32(fan_in))
        return jax.random.uniform(kk, shape, jnp.float32, -bound, bound)

    return {
        # GCNConv weight stored transposed: [in, out] = [T, T]
        "wg_t": u(k[0], (T, T), T),
        "bg": u(k[1], (1, T), T),
        # fc1: Linear(T, n) -> transposed [T, n]
        "w1_t": u(k[2], (T, n), T),
        "b1": u(k[3], (1, n), T),
        # fc2: Linear(n^2, n^2) -> transposed [n^2, n^2]
        "w2_t": u(k[4], (n2, n2), n2),
        "b2": u(k[5], (1, n2), n2),
    }


if __name__ == "__main__":
    key = jax.random.PRNGKey(0)

    n_neurons = 4
    timestep_bin_length = 16
    batch = 2
    N = batch * n_neurons  # total graph nodes

    k_x, k_p = jax.random.split(key)
    x = jax.random.normal(k_x, (N, timestep_bin_length), jnp.float32)

    # Deterministic ring graph (undirected: edges both directions).
    src = jnp.arange(N, dtype=jnp.int32)
    dst = (src + 1) % N
    edge_index = jnp.stack(
        [jnp.concatenate([src, dst]), jnp.concatenate([dst, src])], axis=0
    )

    params = init_params(k_p, n_neurons, timestep_bin_length)
    packed = pack_params(params, n_neurons)

    y_hat = gcn_forward(x, edge_index, packed, n_neurons)
    jax.block_until_ready(y_hat)

    assert y_hat.shape == (batch * n_neurons * n_neurons,)

    # Loose tolerance: kernel feeds the MXU bf16 inputs (f32 accumulation).
    y_ref = gcn_reference(x, edge_index, params, n_neurons)
    assert jnp.allclose(y_hat, y_ref, rtol=5e-2, atol=5e-2), float(
        jnp.max(jnp.abs(y_hat - y_ref))
    )

    print("KERNEL_OK")
</pallas_src>

<mosaic_0001>
module attributes {stable_mosaic.version = 11 : i64} {
  func.func private @main(%arg0: i32) attributes {dimension_semantics = [#tpu.dimension_semantics<core_parallel>], iteration_bounds = array<i64: 2>, tpu.core_type = #tpu.core_type<sc_scalar_subcore>, window_params = []} {
    return
  }
}

module attributes {stable_mosaic.version = 11 : i64} {
  func.func private @main(%arg0: i32) attributes {dimension_semantics = [#tpu.dimension_semantics<core_parallel>], iteration_bounds = array<i64: 2>, tpu.core_type = #tpu.core_type<sc_scalar_subcore>, window_params = []} {
    return
  }
}

module attributes {stable_mosaic.version = 11 : i64} {
  func.func @gcn_fused_kernel(%arg0: i32, %arg1: memref<32x8xbf16, #tpu.memory_space<vmem>>, %arg2: memref<8x4xbf16, #tpu.memory_space<vmem>>, %arg3: memref<1x4xf32, #tpu.memory_space<vmem>>, %arg4: memref<4x4x128xbf16, #tpu.memory_space<vmem>>, %arg5: memref<1x128xf32, #tpu.memory_space<vmem>>, %arg6: memref<8x128xf32, #tpu.memory_space<vmem>>) attributes {dimension_semantics = [#tpu.dimension_semantics<parallel>], iteration_bounds = array<i64: 1>, scalar_prefetch = 0 : i64, scratch_operands = 0 : i64, tpu.core_type = #tpu.core_type<tc>, window_params = [{transform_indices = @transform_0, window_bounds = array<i64: 32, 8>}, {pipeline_mode = #tpu.pipeline_mode<synchronous>, transform_indices = @transform_1, window_bounds = array<i64: 8, 4>}, {pipeline_mode = #tpu.pipeline_mode<synchronous>, transform_indices = @transform_2, window_bounds = array<i64: 1, 4>}, {pipeline_mode = #tpu.pipeline_mode<synchronous>, transform_indices = @transform_3, window_bounds = array<i64: 4, 4, 128>}, {pipeline_mode = #tpu.pipeline_mode<synchronous>, transform_indices = @transform_4, window_bounds = array<i64: 1, 128>}, {transform_indices = @transform_5, window_bounds = array<i64: 8, 128>}]} {
    %c0 = arith.constant 0 : index
    %c0_0 = arith.constant 0 : index
    %0 = vector.load %arg1[%c0, %c0_0] : memref<32x8xbf16, #tpu.memory_space<vmem>>, vector<32x8xbf16>
    %c0_1 = arith.constant 0 : index
    %c0_2 = arith.constant 0 : index
    %1 = vector.load %arg2[%c0_1, %c0_2] : memref<8x4xbf16, #tpu.memory_space<vmem>>, vector<8x4xbf16>
    %cst = arith.constant dense<0.000000e+00> : vector<32x4xf32>
    %2 = tpu.matmul %0, %1, %cst {dimension_numbers = #tpu.dot_dimension_numbers<[1], [0], [0], [1], [0, 0, 1, 1], [], []>} : vector<32x8xbf16>, vector<8x4xbf16>, vector<32x4xf32> -> vector<32x4xf32>
    %c0_3 = arith.constant 0 : index
    %c0_4 = arith.constant 0 : index
    %3 = vector.load %arg3[%c0_3, %c0_4] : memref<1x4xf32, #tpu.memory_space<vmem>>, vector<1x4xf32>
    %4 = vector.broadcast %3 : vector<1x4xf32> to vector<32x4xf32>
    %5 = arith.addf %2, %4 : vector<32x4xf32>
    %cst_5 = arith.constant 0.000000e+00 : f32
    %6 = vector.broadcast %cst_5 : f32 to vector<32x4xf32>
    %7 = arith.maximumf %5, %6 : vector<32x4xf32>
    %c0_6 = arith.constant 0 : index
    %c0_7 = arith.constant 0 : index
    %c0_8 = arith.constant 0 : index
    %8 = vector.load %arg4[%c0_6, %c0_7, %c0_8] : memref<4x4x128xbf16, #tpu.memory_space<vmem>>, vector<4x4x128xbf16>
    %c0_9 = arith.constant 0 : index
    %c0_10 = arith.constant 0 : index
    %9 = vector.load %arg5[%c0_9, %c0_10] : memref<1x128xf32, #tpu.memory_space<vmem>>, vector<1x128xf32>
    %10 = vector.shape_cast %9 : vector<1x128xf32> to vector<1x128xf32>
    %11 = vector.broadcast %10 : vector<1x128xf32> to vector<8x128xf32>
    %12 = vector.extract_strided_slice %7 {offsets = [0, 0], sizes = [8, 4], strides = [1, 1]} : vector<32x4xf32> to vector<8x4xf32>
    %13 = arith.truncf %12 : vector<8x4xf32> to vector<8x4xbf16>
    %14 = vector.extract_strided_slice %8 {offsets = [0, 0, 0], sizes = [1, 4, 128], strides = [1, 1, 1]} : vector<4x4x128xbf16> to vector<1x4x128xbf16>
    %15 = vector.shape_cast %14 : vector<1x4x128xbf16> to vector<4x128xbf16>
    %cst_11 = arith.constant dense<0.000000e+00> : vector<8x128xf32>
    %16 = tpu.matmul %13, %15, %cst_11 {dimension_numbers = #tpu.dot_dimension_numbers<[1], [0], [0], [1], [0, 0, 1, 1], [], []>} : vector<8x4xbf16>, vector<4x128xbf16>, vector<8x128xf32> -> vector<8x128xf32>
    %17 = arith.addf %11, %16 : vector<8x128xf32>
    %18 = vector.extract_strided_slice %7 {offsets = [8, 0], sizes = [8, 4], strides = [1, 1]} : vector<32x4xf32> to vector<8x4xf32>
    %19 = arith.truncf %18 : vector<8x4xf32> to vector<8x4xbf16>
    %20 = vector.extract_strided_slice %8 {offsets = [1, 0, 0], sizes = [1, 4, 128], strides = [1, 1, 1]} : vector<4x4x128xbf16> to vector<1x4x128xbf16>
    %21 = vector.shape_cast %20 : vector<1x4x128xbf16> to vector<4x128xbf16>
    %cst_12 = arith.constant dense<0.000000e+00> : vector<8x128xf32>
    %22 = tpu.matmul %19, %21, %cst_12 {dimension_numbers = #tpu.dot_dimension_numbers<[1], [0], [0], [1], [0, 0, 1, 1], [], []>} : vector<8x4xbf16>, vector<4x128xbf16>, vector<8x128xf32> -> vector<8x128xf32>
    %23 = arith.addf %17, %22 : vector<8x128xf32>
    %24 = vector.extract_strided_slice %7 {offsets = [16, 0], sizes = [8, 4], strides = [1, 1]} : vector<32x4xf32> to vector<8x4xf32>
    %25 = arith.truncf %24 : vector<8x4xf32> to vector<8x4xbf16>
    %26 = vector.extract_strided_slice %8 {offsets = [2, 0, 0], sizes = [1, 4, 128], strides = [1, 1, 1]} : vector<4x4x128xbf16> to vector<1x4x128xbf16>
    %27 = vector.shape_cast %26 : vector<1x4x128xbf16> to vector<4x128xbf16>
    %cst_13 = arith.constant dense<0.000000e+00> : vector<8x128xf32>
    %28 = tpu.matmul %25, %27, %cst_13 {dimension_numbers = #tpu.dot_dimension_numbers<[1], [0], [0], [1], [0, 0, 1, 1], [], []>} : vector<8x4xbf16>, vector<4x128xbf16>, vector<8x128xf32> -> vector<8x128xf32>
    %29 = arith.addf %23, %28 : vector<8x128xf32>
    %30 = vector.extract_strided_slice %7 {offsets = [24, 0], sizes = [8, 4], strides = [1, 1]} : vector<32x4xf32> to vector<8x4xf32>
    %31 = arith.truncf %30 : vector<8x4xf32> to vector<8x4xbf16>
    %32 = vector.extract_strided_slice %8 {offsets = [3, 0, 0], sizes = [1, 4, 128], strides = [1, 1, 1]} : vector<4x4x128xbf16> to vector<1x4x128xbf16>
    %33 = vector.shape_cast %32 : vector<1x4x128xbf16> to vector<4x128xbf16>
    %cst_14 = arith.constant dense<0.000000e+00> : vector<8x128xf32>
    %34 = tpu.matmul %31, %33, %cst_14 {dimension_numbers = #tpu.dot_dimension_numbers<[1], [0], [0], [1], [0, 0, 1, 1], [], []>} : vector<8x4xbf16>, vector<4x128xbf16>, vector<8x128xf32> -> vector<8x128xf32>
    %35 = arith.addf %29, %34 : vector<8x128xf32>
    %c0_15 = arith.constant 0 : index
    %c0_16 = arith.constant 0 : index
    %36 = vector.load %arg6[%c0_15, %c0_16] : memref<8x128xf32, #tpu.memory_space<vmem>>, vector<8x128xf32>
    tpu.vector_store %arg6[%c0_15, %c0_16], %35 {strides = array<i32>} : memref<8x128xf32, #tpu.memory_space<vmem>>, vector<8x128xf32>,
    return
  }
  func.func @transform_0(%arg0: i32) -> (i32, i32) {
    %c0_i32 = arith.constant 0 : i32
    %c0_i32_0 = arith.constant 0 : i32
    return %arg0, %c0_i32 : i32, i32
  }
  func.func @transform_1(%arg0: i32) -> (i32, i32) {
    %c0_i32 = arith.constant 0 : i32
    %c0_i32_0 = arith.constant 0 : i32
    %c0_i32_1 = arith.constant 0 : i32
    return %c0_i32, %c0_i32_0 : i32, i32
  }
  func.func @transform_2(%arg0: i32) -> (i32, i32) {
    %c0_i32 = arith.constant 0 : i32
    %c0_i32_0 = arith.constant 0 : i32
    %c0_i32_1 = arith.constant 0 : i32
    return %c0_i32, %c0_i32_0 : i32, i32
  }
  func.func @transform_3(%arg0: i32) -> (i32, i32, i32) {
    %c0_i32 = arith.constant 0 : i32
    %c0_i32_0 = arith.constant 0 : i32
    %c0_i32_1 = arith.constant 0 : i32
    %c0_i32_2 = arith.constant 0 : i32
    return %c0_i32, %c0_i32_0, %c0_i32_1 : i32, i32, i32
  }
  func.func @transform_4(%arg0: i32) -> (i32, i32) {
    %c0_i32 = arith.constant 0 : i32
    %c0_i32_0 = arith.constant 0 : i32
    %c0_i32_1 = arith.constant 0 : i32
    return %c0_i32, %c0_i32_0 : i32, i32
  }
  func.func @transform_5(%arg0: i32) -> (i32, i32) {
    %c0_i32 = arith.constant 0 : i32
    %c0_i32_0 = arith.constant 0 : i32
    return %arg0, %c0_i32 : i32, i32
  }
}

</mosaic_0001>

<bundles_post_ra>
// kernel: gcn_forward.1
= control target key start
LH: loop header
LB: loop body
LE: loop exit
PB: predicated region body
PF: predicated region fallthrough
CT: control target
= control target key end

     0   :  { %vm50_vm0 = vcmask 1043456   ;;  %vm43_vm1 = vcmask 64512   ;;  %vm123_vm2 = vcmask 1041408   ;;  %v383_v5 = vmov 0.0   ;;  %s457_s1 = inlined_call_operand.vmem [shape: bf16[8,4], index: 1, kind: input, shape index: {}]   ;;  %s458_s0 = inlined_call_operand.vmem [shape: bf16[32,8], index: 0, kind: input, shape index: {}]   ;;  %s459_s3 = inlined_call_operand.vmem [shape: bf16[4,4,128], index: 3, kind: input, shape index: {}]   ;;  %s460_s2 = inlined_call_operand.vmem [shape: f32[1,4], index: 2, kind: input, shape index: {}]   ;;  %s461_s4 = inlined_call_operand.vmem [shape: f32[1,128], index: 4, kind: input, shape index: {}]   ;;  %s462_s5 = inlined_call_operand.vmem [shape: f32[8,128], index: 5, kind: output, shape index: {}]  }
   0x1   :  { %v25_v0 = vld [vmem:[%s457_s1] sm:$0xf]  ;;  %v382_v3 = vld [vmem:[%s458_s0 + $0x8] sm:$0xff]   ;;  %350 = vmatprep.subr.bf16.mxu1 %v383_v5  ;;  %vm384_vm3 = vmmov 0   ;;  %v109_v9 = vld [vmem:[%s459_s3 + $0x4] sm:$0x3] }
   0x2   :  { %378 = vmatprep.subr.msk.bf16.mxu0 %vm50_vm0, %v25_v0  ;;  %v52_v1 = vsel %vm50_vm0, %v25_v0, 0  ;;  %v381_v2 = vld [vmem:[%s458_s0] sm:$0xff]   ;;  %352 = vmatprep.mubr.msk.bf16.mxu1 %vm384_vm3, %v383_v5  ;;  %v221_v10 = vsel %vm123_vm2, %v109_v9, 0  ;;  %vm119_vm4 = vcmask 31744  }
   0x3   :  { %339 = vmatpush3.bf16.msra.mxu0 %v52_v1  ;;  %340 = vmatprep.mubr.msk.bf16.mxu0 %vm43_vm1, %v381_v2  ;;  %v107_v4 = vld [vmem:[%s459_s3] sm:$0x3]  ;;  %v108_v7 = vld [vmem:[%s459_s3 + $0x2] sm:$0x3]  ;;  %v110_v11 = vld [vmem:[%s459_s3 + $0x6] sm:$0x3] }
   0x4   :  { %344 = vmatprep.subr.bf16.mxu0 %v383_v5  ;;  %v125_v6 = vsel %vm123_vm2, %v107_v4, 0  ;;  %v173_v8 = vsel %vm123_vm2, %v108_v7, 0  ;;  %v269_v12 = vsel %vm123_vm2, %v110_v11, 0  ;;  %v317_v13 = vld [vmem:[%s460_s2] ss:$0 sm:$0xff] }
   0x5   :  { %351 = vmatpush3.bf16.msra.mxu1 %v173_v8  ;;  %v322_v34 = vld [vmem:[%s461_s4] ss:$0 sm:$0xff] }
   0x6   :  { %341 = vmatmul.mubr.msk.bf16.vlgmr.msra.gmra.mrb[0].mxu0 %vm43_vm1, %v382_v3  ;;  %356 = vmatprep.subr.bf16.mxu1 %v383_v5 }
   0x7   :  { %345 = vmatpush3.bf16.msra.mxu0 %v125_v6  ;;  %346 = vmatprep.mubr.msk.bf16.mxu0 %vm384_vm3, %v383_v5 }
  0xd9   :  { %v342_v14 = vpop.f32.mrb[0].mxu0 }
  0xda   :  { %v88_v15 = vpop.f32.mrb[1].mxu0  ;;  %v97_v24 = vadd.f32 %v342_v14, %v317_v13 }
  0xdb   :  { %v89_v16 = vadd.f32 %v317_v13, %v88_v15  ;;  %v343_v17 = vpop.f32.mrb[2].mxu0 }
  0xdc   :  { %v91_v18 = vpop.f32.mrb[3].mxu0  ;;  %v105_v25 = vmax.f32 %v97_v24, 0.0  ;;  %v100_v27 = vadd.f32 %v343_v17, %v317_v13 }
  0xdd   :  { %v103_v19 = vmax.f32 %v89_v16, 0.0  ;;  %v92_v20 = vadd.f32 %v317_v13, %v91_v18 }
  0xde   :  { %v216_v26 = vpack.c.bf16 %v105_v25, %v105_v25  ;;  %v106_v28 = vmax.f32 %v100_v27, 0.0 }
  0xdf   :  { %v118_v21 = vpack.c.bf16 %v103_v19, %v103_v19  ;;  %v104_v22 = vmax.f32 %v92_v20, 0.0 }
  0xe0   :  { %v264_v29 = vpack.c.bf16 %v106_v28, %v106_v28 }
  0xe1   :  { %v168_v23 = vpack.c.bf16 %v104_v22, %v104_v22  ;;  %347 = vmatmul.mubr.msk.bf16.vlgmr.msra.gmra.mrb[4].mxu0 %vm119_vm4, %v118_v21 }
  0xe3   :  { %353 = vmatmul.mubr.msk.bf16.vlgmr.msra.gmra.mrb[0].mxu1 %vm119_vm4, %v168_v23 }
  0xe4   :  { %357 = vmatpush3.bf16.msra.mxu1 %v221_v10  ;;  %358 = vmatprep.mubr.msk.bf16.mxu1 %vm384_vm3, %v383_v5 }
  0xe5   :  { %362 = vmatprep.subr.bf16.mxu1 %v383_v5 }
  0xef   :  { %359 = vmatmul.mubr.msk.bf16.vlgmr.msra.gmra.mrb[0].mxu1 %vm119_vm4, %v216_v26 }
  0xf0   :  { %363 = vmatpush3.bf16.msra.mxu1 %v269_v12  ;;  %364 = vmatprep.mubr.msk.bf16.mxu1 %vm384_vm3, %v383_v5 }
  0xfb   :  { %365 = vmatmul.mubr.msk.bf16.vlgmr.msra.gmra.mrb[0].mxu1 %vm119_vm4, %v264_v29 }
 0x1b4   :  { %v161_v30 = vpop.f32.mrb[4].mxu0 }
 0x1b5   :  { %v348_v31 = vpop.f32.mrb[5].mxu0  ;;  %v167_v35 = vadd.f32 %v322_v34, %v161_v30 }
 0x1b6   :  { %v164_v32 = vpop.f32.mrb[6].mxu0 }
 0x1b7   :  { %v349_v33 = vpop.f32.mrb[7].mxu0 }
 0x1ce   :  { %v305_v36 = vpop.f32.mrb[0].mxu1 }
 0x1cf   :  { %v369_v37 = vadd.f32 %v305_v36, %v167_v35  ;;  %v366_v38 = vpop.f32.mrb[1].mxu1 }
 0x1d0   :  { %v308_v39 = vpop.f32.mrb[2].mxu1 }
 0x1d1   :  { %312 = vst [vmem:[%s462_s5] sm:$0xff] %v369_v37  ;;  %v367_v40 = vpop.f32.mrb[3].mxu1 }

</bundles_post_ra>
